<compile_context>
chip_gen: v7x
topology: tpu7x:2x2x1
jax: 0.10.0
libtpu: 0.0.40
codegen_flags: <defaults>
</compile_context>

<pallas_src>
import math

import jax
import jax.numpy as jnp
from jax import lax
from jax.experimental import pallas as pl
from jax.experimental import pallas as _pl_unused  # noqa: F401
from jax.experimental.pallas import tpu as pltpu  # noqa: F401  (not needed for a grid-less call)

# ---- small, module-consistent shapes -------------------------------------
T = 8            # sequence length
N = 2            # batch
D = 32           # d_temporal_in
NHEAD = 4
DIM_FF = 64      # dim_feedforward
DH = D // NHEAD              # d_model_head
E = DH * NHEAD               # embed dim of self_attn (== D here)
NT = N * T                   # flattened rows (row = t*N + b)
EPS = 1e-5                   # nn.LayerNorm default
NEG = -1e30                  # additive mask value for cross-batch pairs

# fused projection layout: [VO_all | Q_all | K_all]
VO_W = NHEAD * E             # 128 (lane-tile aligned leading block)
Q_OFF = VO_W                 # 128
K_OFF = VO_W + NHEAD * DH    # 160
FUSED_W = VO_W + 2 * NHEAD * DH  # 192

# PyTorch's MHA applies src_mask.repeat(nhead,1,1); mask for (batch b, head h)
# is src_mask[(b*NHEAD + h) % N].  With NHEAD % N == 0 this reduces to h % N
# for every batch, which is what the kernel uses.
assert NHEAD % N == 0


# ---- kernel: whole encoder layer, both batch elements at once --------------
def encoder_layer_kernel(x_ref, mexp_ref, wfused_ref, l1w_ref, l2w_ref,
                         vecs_ref, out_ref):
    x = x_ref[...]                                                   # (NT, D) f32

    # Fused attention projections (map_embed + qkv + out-proj-fold, all folded
    # into one bf16 weight):  proj = [vo_h0..vo_h3 | q_h0..q_h3 | k_h0..k_h3]
    proj = jnp.dot(x.astype(jnp.bfloat16), wfused_ref[...],
                   preferred_element_type=jnp.float32) + vecs_ref[0:1, :]   # (NT, 192)

    # cross-batch masking pattern over flattened rows (row = t*N + b)
    ridx = lax.broadcasted_iota(jnp.int32, (NT, NT), 0)
    cidx = lax.broadcasted_iota(jnp.int32, (NT, NT), 1)
    same_batch = (ridx % N) == (cidx % N)

    attn = None
    for h in range(NHEAD):                                           # static unroll
        q = proj[:, Q_OFF + h * DH:Q_OFF + (h + 1) * DH]             # (NT, DH), 1/sqrt(DH) folded
        k = proj[:, K_OFF + h * DH:K_OFF + (h + 1) * DH]             # (NT, DH)
        vo = proj[:, h * E:(h + 1) * E]                              # (NT, E), out-proj folded

        s = lax.dot_general(q.astype(jnp.bfloat16), k.astype(jnp.bfloat16),
                            (((1,), (1,)), ((), ())),
                            preferred_element_type=jnp.float32)      # (NT, NT)
        # within-batch: add the (upsampled) src_mask slice for this head;
        # cross-batch pairs get -1e30.
        s = jnp.where(same_batch, s + mexp_ref[h % N], NEG)
        s = s - jnp.max(s, axis=-1, keepdims=True)
        p = jnp.exp(s)
        p = p * pl.reciprocal(jnp.sum(p, axis=-1, keepdims=True), approx=True)
        ho = jnp.dot(p.astype(jnp.bfloat16), vo.astype(jnp.bfloat16),
                     preferred_element_type=jnp.float32)             # (NT, E)
        attn = ho if attn is None else attn + ho

    # residual1 + norm1   (dropout1 is identity, p=0.0) — f32 elementwise
    x1 = x + attn
    mu = jnp.mean(x1, axis=-1, keepdims=True)
    xc = x1 - mu
    var = jnp.mean(xc * xc, axis=-1, keepdims=True)
    x1 = xc * lax.rsqrt(var + EPS) * vecs_ref[3:4, :D] + vecs_ref[4:5, :D]

    # feed-forward: linear2(relu(linear1(x)))   (dropout is identity)
    h1 = jnp.dot(x1.astype(jnp.bfloat16), l1w_ref[...],
                 preferred_element_type=jnp.float32) + vecs_ref[1:2, :DIM_FF]
    h1 = jnp.maximum(h1, 0.0)
    ff = jnp.dot(h1.astype(jnp.bfloat16), l2w_ref[...],
                 preferred_element_type=jnp.float32) + vecs_ref[2:3, :D]

    # residual2 + norm2
    x2 = x1 + ff
    mu2 = jnp.mean(x2, axis=-1, keepdims=True)
    xc2 = x2 - mu2
    var2 = jnp.mean(xc2 * xc2, axis=-1, keepdims=True)
    out_ref[...] = xc2 * lax.rsqrt(var2 + EPS) * vecs_ref[5:6, :D] + vecs_ref[6:7, :D]


# ---- one-time (init-time) weight folding -----------------------------------
def prepare_params(params):
    """Fold map_embed, 1/sqrt(DH), out-projection and biases once, off the per-call path."""
    hp = lax.Precision.HIGHEST
    f32 = jnp.float32
    mapW = params["mapW"].astype(f32)
    mapB = params["mapB"].astype(f32)
    qkvW = params["qkvW"].astype(f32)
    qkvB = params["qkvB"].astype(f32)
    outW = params["outW"].astype(f32)
    outB = params["outB"].astype(f32)

    scale = 1.0 / math.sqrt(DH)
    Wq, Wk, Wv = qkvW[:, :E] * scale, qkvW[:, E:2 * E], qkvW[:, 2 * E:]
    bq, bk, bv = qkvB[:, :E] * scale, qkvB[:, E:2 * E], qkvB[:, 2 * E:]

    # fold map_embed: proj(x) = (x@mapW + mapB)@W + b = x@(mapW@W) + (mapB@W + b)
    WqF = jnp.dot(mapW, Wq, precision=hp)
    bqF = jnp.dot(mapB, Wq, precision=hp) + bq
    WkF = jnp.dot(mapW, Wk, precision=hp)
    bkF = jnp.dot(mapB, Wk, precision=hp) + bk
    WvF = jnp.dot(mapW, Wv, precision=hp)
    bvF = jnp.dot(mapB, Wv, precision=hp) + bv

    # fold out-projection into V, per head
    WvO, bvO = [], []
    for h in range(NHEAD):
        outW_h = outW[h * DH:(h + 1) * DH, :]                        # (DH, E)
        WvO.append(jnp.dot(WvF[:, h * DH:(h + 1) * DH], outW_h, precision=hp))  # (D, E)
        bvO.append(jnp.dot(bvF[:, h * DH:(h + 1) * DH], outW_h, precision=hp))  # (1, E)
    bvO[0] = bvO[0] + outB                                           # outB folded into head 0

    w_fused = jnp.concatenate(WvO + [WqF, WkF], axis=1)              # (D, 192)
    b_fused = jnp.concatenate(bvO + [bqF, bkF], axis=1)              # (1, 192)

    # pack all tiny vector params into one operand (rows, zero padded to 192 lanes)
    vecs = jnp.zeros((8, FUSED_W), f32)
    vecs = vecs.at[0, :].set(b_fused[0])
    vecs = vecs.at[1, :DIM_FF].set(params["l1b"].astype(f32)[0])
    vecs = vecs.at[2, :D].set(params["l2b"].astype(f32)[0])
    vecs = vecs.at[3, :D].set(params["ln1g"].astype(f32)[0])
    vecs = vecs.at[4, :D].set(params["ln1b"].astype(f32)[0])
    vecs = vecs.at[5, :D].set(params["ln2g"].astype(f32)[0])
    vecs = vecs.at[6, :D].set(params["ln2b"].astype(f32)[0])

    return {
        "wfused": w_fused.astype(jnp.bfloat16),                      # MXU operands in bf16
        "l1w": params["l1W"].astype(jnp.bfloat16),
        "l2w": params["l2W"].astype(jnp.bfloat16),
        "vecs": vecs,                                                # f32 (adds / LN stay f32)
    }


# ---- per-call wrapper (jitted; only reshape + 2-op mask upsample) -----------
@jax.jit
def transformer_encoder_layer(src_tnd, src_mask, prepped):
    """src_tnd: (T, N, D) float32, src_mask: (N, T, T) additive float mask."""
    src_flat = src_tnd.astype(jnp.float32).reshape(NT, D)            # row = t*N + b, no transpose
    # nearest-neighbour upsample so mexp[m, r, c] == src_mask[m, r//N, c//N]
    sm = src_mask.astype(jnp.float32)
    mexp = jnp.repeat(jnp.repeat(sm, N, axis=1), N, axis=2)          # (N, NT, NT)

    out_flat = pl.pallas_call(
        encoder_layer_kernel,
        out_shape=jax.ShapeDtypeStruct((NT, D), jnp.float32),
    )(src_flat, mexp, prepped["wfused"], prepped["l1w"], prepped["l2w"],
      prepped["vecs"])

    return out_flat.reshape(T, N, D)


# ---- pure-JAX reference (original, un-folded f32 math) ----------------------
def reference(src_tnd, src_mask, p):
    hp = lax.Precision.HIGHEST
    src = jnp.transpose(src_tnd, (1, 0, 2)).astype(jnp.float32)
    mask_bh = jnp.tile(src_mask.astype(jnp.float32), (NHEAD, 1, 1)).reshape(N, NHEAD, T, T)

    def one(x, m):
        e = jnp.dot(x, p["mapW"], precision=hp) + p["mapB"][0]
        qkv = jnp.dot(e, p["qkvW"], precision=hp) + p["qkvB"][0]
        q, k, v = qkv[:, :E], qkv[:, E:2 * E], qkv[:, 2 * E:]
        outs = []
        for h in range(NHEAD):
            qh = q[:, h * DH:(h + 1) * DH] / math.sqrt(DH)
            s = jnp.dot(qh, k[:, h * DH:(h + 1) * DH].T, precision=hp) + m[h]
            pr = jax.nn.softmax(s, axis=-1)
            outs.append(jnp.dot(pr, v[:, h * DH:(h + 1) * DH], precision=hp))
        a = jnp.dot(jnp.concatenate(outs, -1), p["outW"], precision=hp) + p["outB"][0]
        x1 = x + a
        x1 = (x1 - x1.mean(-1, keepdims=True)) / jnp.sqrt(x1.var(-1, keepdims=True) + EPS) \
            * p["ln1g"][0] + p["ln1b"][0]
        h1 = jnp.maximum(jnp.dot(x1, p["l1W"], precision=hp) + p["l1b"][0], 0.0)
        ff = jnp.dot(h1, p["l2W"], precision=hp) + p["l2b"][0]
        x2 = x1 + ff
        x2 = (x2 - x2.mean(-1, keepdims=True)) / jnp.sqrt(x2.var(-1, keepdims=True) + EPS) \
            * p["ln2g"][0] + p["ln2b"][0]
        return x2

    return jnp.transpose(jax.vmap(one)(src, mask_bh), (1, 0, 2))


# TODO(synk): nhead_treat > 0 and treat_attention_type in {'linear','mlp'}
# branches (treat_attn / querry_mod / mlp_head) are not exercised in this
# default configuration and are not implemented here.

if __name__ == "__main__":
    key = jax.random.PRNGKey(0)
    ks = jax.random.split(key, 20)

    # weights stored pre-transposed so kernels compute x @ W + b
    params = {
        "mapW": 0.1 * jax.random.normal(ks[0], (D, E), jnp.float32),
        "mapB": 0.1 * jax.random.normal(ks[1], (1, E), jnp.float32),
        "qkvW": 0.1 * jax.random.normal(ks[2], (E, 3 * E), jnp.float32),
        "qkvB": 0.1 * jax.random.normal(ks[3], (1, 3 * E), jnp.float32),
        "outW": 0.1 * jax.random.normal(ks[4], (E, E), jnp.float32),
        "outB": 0.1 * jax.random.normal(ks[5], (1, E), jnp.float32),
        "ln1g": 1.0 + 0.05 * jax.random.normal(ks[6], (1, D), jnp.float32),
        "ln1b": 0.05 * jax.random.normal(ks[7], (1, D), jnp.float32),
        "l1W": 0.1 * jax.random.normal(ks[8], (D, DIM_FF), jnp.float32),
        "l1b": 0.1 * jax.random.normal(ks[9], (1, DIM_FF), jnp.float32),
        "l2W": 0.1 * jax.random.normal(ks[10], (DIM_FF, D), jnp.float32),
        "l2b": 0.1 * jax.random.normal(ks[11], (1, D), jnp.float32),
        "ln2g": 1.0 + 0.05 * jax.random.normal(ks[12], (1, D), jnp.float32),
        "ln2b": 0.05 * jax.random.normal(ks[13], (1, D), jnp.float32),
    }

    src = jax.random.normal(ks[14], (T, N, D), jnp.float32)             # T x N x D
    src_mask = 0.1 * jax.random.normal(ks[15], (N, T, T), jnp.float32)  # additive float mask

    prepped = jax.block_until_ready(prepare_params(params))             # one-time init cost

    out = transformer_encoder_layer(src, src_mask, prepped)
    out = jax.block_until_ready(out)

    ref = jax.block_until_ready(reference(src, src_mask, params))
    assert out.shape == (T, N, D)
    # bf16 MXU operands + approx reciprocal change numerics at the ~1e-3 level.
    assert jnp.allclose(out, ref, atol=2e-2, rtol=2e-2), "mismatch vs reference"

    print("KERNEL_OK")
</pallas_src>

<mosaic_0001>
module attributes {stable_mosaic.version = 11 : i64} {
  func.func @encoder_layer_kernel(%arg0: memref<16x32xf32, #tpu.memory_space<vmem>>, %arg1: memref<2x16x16xf32, #tpu.memory_space<vmem>>, %arg2: memref<32x192xbf16, #tpu.memory_space<vmem>>, %arg3: memref<32x64xbf16, #tpu.memory_space<vmem>>, %arg4: memref<64x32xbf16, #tpu.memory_space<vmem>>, %arg5: memref<8x192xf32, #tpu.memory_space<vmem>>, %arg6: memref<16x32xf32, #tpu.memory_space<vmem>>) attributes {dimension_semantics = [], scalar_prefetch = 0 : i64, scratch_operands = 0 : i64, tpu.core_type = #tpu.core_type<tc>} {
    %c0 = arith.constant 0 : index
    %c0_0 = arith.constant 0 : index
    %0 = vector.load %arg0[%c0, %c0_0] : memref<16x32xf32, #tpu.memory_space<vmem>>, vector<16x32xf32>
    %1 = arith.truncf %0 : vector<16x32xf32> to vector<16x32xbf16>
    %c0_1 = arith.constant 0 : index
    %c0_2 = arith.constant 0 : index
    %2 = vector.load %arg2[%c0_1, %c0_2] : memref<32x192xbf16, #tpu.memory_space<vmem>>, vector<32x192xbf16>
    %cst = arith.constant dense<0.000000e+00> : vector<16x192xf32>
    %3 = tpu.matmul %1, %2, %cst {dimension_numbers = #tpu.dot_dimension_numbers<[1], [0], [0], [1], [0, 0, 1, 1], [], []>} : vector<16x32xbf16>, vector<32x192xbf16>, vector<16x192xf32> -> vector<16x192xf32>
    %c0_3 = arith.constant 0 : index
    %c0_4 = arith.constant 0 : index
    %4 = vector.load %arg5[%c0_3, %c0_4] : memref<8x192xf32, #tpu.memory_space<vmem>>, vector<1x192xf32>
    %5 = vector.broadcast %4 : vector<1x192xf32> to vector<16x192xf32>
    %6 = arith.addf %3, %5 : vector<16x192xf32>
    %7 = tpu.iota {dimensions = array<i32: 0>} : vector<16x16xi32>
    %8 = tpu.iota {dimensions = array<i32: 1>} : vector<16x16xi32>
    %c2_i32 = arith.constant 2 : i32
    %c0_i32 = arith.constant 0 : i32
    %9 = arith.cmpi eq, %c2_i32, %c0_i32 : i32
    %c1_i32 = arith.constant 1 : i32
    %10 = arith.select %9, %c1_i32, %c2_i32 : i32
    %11 = vector.broadcast %10 : i32 to vector<16x16xi32>
    %12 = arith.remsi %7, %11 : vector<16x16xi32>
    %c0_i32_5 = arith.constant 0 : i32
    %13 = vector.broadcast %c0_i32_5 : i32 to vector<16x16xi32>
    %14 = arith.cmpi ne, %12, %13 : vector<16x16xi32>
    %c0_i32_6 = arith.constant 0 : i32
    %15 = vector.broadcast %c0_i32_6 : i32 to vector<16x16xi32>
    %16 = arith.cmpi slt, %12, %15 : vector<16x16xi32>
    %c0_i32_7 = arith.constant 0 : i32
    %17 = arith.cmpi slt, %10, %c0_i32_7 : i32
    %18 = vector.broadcast %17 : i1 to vector<16x16xi1>
    %19 = vector.broadcast %18 : vector<16x16xi1> to vector<16x16xi1>
    %20 = arith.xori %16, %19 : vector<16x16xi1>
    %21 = arith.andi %20, %14 : vector<16x16xi1>
    %22 = vector.broadcast %10 : i32 to vector<16x16xi32>
    %23 = arith.addi %12, %22 : vector<16x16xi32>
    %24 = arith.select %21, %23, %12 : vector<16x16xi1>, vector<16x16xi32>
    %c2_i32_8 = arith.constant 2 : i32
    %c0_i32_9 = arith.constant 0 : i32
    %25 = arith.cmpi eq, %c2_i32_8, %c0_i32_9 : i32
    %c1_i32_10 = arith.constant 1 : i32
    %26 = arith.select %25, %c1_i32_10, %c2_i32_8 : i32
    %27 = vector.broadcast %26 : i32 to vector<16x16xi32>
    %28 = arith.remsi %8, %27 : vector<16x16xi32>
    %c0_i32_11 = arith.constant 0 : i32
    %29 = vector.broadcast %c0_i32_11 : i32 to vector<16x16xi32>
    %30 = arith.cmpi ne, %28, %29 : vector<16x16xi32>
    %c0_i32_12 = arith.constant 0 : i32
    %31 = vector.broadcast %c0_i32_12 : i32 to vector<16x16xi32>
    %32 = arith.cmpi slt, %28, %31 : vector<16x16xi32>
    %c0_i32_13 = arith.constant 0 : i32
    %33 = arith.cmpi slt, %26, %c0_i32_13 : i32
    %34 = vector.broadcast %33 : i1 to vector<16x16xi1>
    %35 = vector.broadcast %34 : vector<16x16xi1> to vector<16x16xi1>
    %36 = arith.xori %32, %35 : vector<16x16xi1>
    %37 = arith.andi %36, %30 : vector<16x16xi1>
    %38 = vector.broadcast %26 : i32 to vector<16x16xi32>
    %39 = arith.addi %28, %38 : vector<16x16xi32>
    %40 = arith.select %37, %39, %28 : vector<16x16xi1>, vector<16x16xi32>
    %41 = arith.cmpi eq, %24, %40 : vector<16x16xi32>
    %42 = vector.extract_strided_slice %6 {offsets = [0, 128], sizes = [16, 8], strides = [1, 1]} : vector<16x192xf32> to vector<16x8xf32>
    %43 = vector.extract_strided_slice %6 {offsets = [0, 160], sizes = [16, 8], strides = [1, 1]} : vector<16x192xf32> to vector<16x8xf32>
    %44 = vector.extract_strided_slice %6 {offsets = [0, 0], sizes = [16, 32], strides = [1, 1]} : vector<16x192xf32> to vector<16x32xf32>
    %45 = arith.truncf %42 : vector<16x8xf32> to vector<16x8xbf16>
    %46 = arith.truncf %43 : vector<16x8xf32> to vector<16x8xbf16>
    %cst_14 = arith.constant dense<0.000000e+00> : vector<16x16xf32>
    %47 = tpu.matmul %45, %46, %cst_14 {dimension_numbers = #tpu.dot_dimension_numbers<[1], [1], [0], [0], [0, 0, 1, 0], [], []>} : vector<16x8xbf16>, vector<16x8xbf16>, vector<16x16xf32> -> vector<16x16xf32>
    %c0_15 = arith.constant 0 : index
    %c0_16 = arith.constant 0 : index
    %c0_17 = arith.constant 0 : index
    %48 = vector.load %arg1[%c0_15, %c0_16, %c0_17] : memref<2x16x16xf32, #tpu.memory_space<vmem>>, vector<1x16x16xf32>
    %49 = vector.shape_cast %48 : vector<1x16x16xf32> to vector<16x16xf32>
    %50 = arith.addf %47, %49 : vector<16x16xf32>
    %cst_18 = arith.constant -1.000000e+30 : f32
    %51 = vector.broadcast %cst_18 : f32 to vector<16x16xf32>
    %52 = arith.select %41, %50, %51 : vector<16x16xi1>, vector<16x16xf32>
    %cst_19 = arith.constant dense<0xFF800000> : vector<16xf32>
    %53 = vector.multi_reduction <maximumf>, %52, %cst_19 [1] : vector<16x16xf32> to vector<16xf32>
    %54 = vector.shape_cast %53 : vector<16xf32> to vector<16x1xf32>
    %55 = vector.broadcast %54 : vector<16x1xf32> to vector<16x16xf32>
    %56 = arith.subf %52, %55 : vector<16x16xf32>
    %57 = math.exp %56 : vector<16x16xf32>
    %cst_20 = arith.constant dense<0.000000e+00> : vector<16xf32>
    %58 = vector.multi_reduction <add>, %57, %cst_20 [1] : vector<16x16xf32> to vector<16xf32>
    %59 = vector.shape_cast %58 : vector<16xf32> to vector<16x1xf32>
    %60 = tpu.reciprocal %59 {approx = true} : vector<16x1xf32> -> vector<16x1xf32>
    %61 = vector.broadcast %60 : vector<16x1xf32> to vector<16x16xf32>
    %62 = arith.mulf %57, %61 : vector<16x16xf32>
    %63 = arith.truncf %62 : vector<16x16xf32> to vector<16x16xbf16>
    %64 = arith.truncf %44 : vector<16x32xf32> to vector<16x32xbf16>
    %cst_21 = arith.constant dense<0.000000e+00> : vector<16x32xf32>
    %65 = tpu.matmul %63, %64, %cst_21 {dimension_numbers = #tpu.dot_dimension_numbers<[1], [0], [0], [1], [0, 0, 1, 1], [], []>} : vector<16x16xbf16>, vector<16x32xbf16>, vector<16x32xf32> -> vector<16x32xf32>
    %66 = vector.extract_strided_slice %6 {offsets = [0, 136], sizes = [16, 8], strides = [1, 1]} : vector<16x192xf32> to vector<16x8xf32>
    %67 = vector.extract_strided_slice %6 {offsets = [0, 168], sizes = [16, 8], strides = [1, 1]} : vector<16x192xf32> to vector<16x8xf32>
    %68 = vector.extract_strided_slice %6 {offsets = [0, 32], sizes = [16, 32], strides = [1, 1]} : vector<16x192xf32> to vector<16x32xf32>
    %69 = arith.truncf %66 : vector<16x8xf32> to vector<16x8xbf16>
    %70 = arith.truncf %67 : vector<16x8xf32> to vector<16x8xbf16>
    %cst_22 = arith.constant dense<0.000000e+00> : vector<16x16xf32>
    %71 = tpu.matmul %69, %70, %cst_22 {dimension_numbers = #tpu.dot_dimension_numbers<[1], [1], [0], [0], [0, 0, 1, 0], [], []>} : vector<16x8xbf16>, vector<16x8xbf16>, vector<16x16xf32> -> vector<16x16xf32>
    %c1 = arith.constant 1 : index
    %c0_23 = arith.constant 0 : index
    %c0_24 = arith.constant 0 : index
    %72 = vector.load %arg1[%c1, %c0_23, %c0_24] : memref<2x16x16xf32, #tpu.memory_space<vmem>>, vector<1x16x16xf32>
    %73 = vector.shape_cast %72 : vector<1x16x16xf32> to vector<16x16xf32>
    %74 = arith.addf %71, %73 : vector<16x16xf32>
    %cst_25 = arith.constant -1.000000e+30 : f32
    %75 = vector.broadcast %cst_25 : f32 to vector<16x16xf32>
    %76 = arith.select %41, %74, %75 : vector<16x16xi1>, vector<16x16xf32>
    %cst_26 = arith.constant dense<0xFF800000> : vector<16xf32>
    %77 = vector.multi_reduction <maximumf>, %76, %cst_26 [1] : vector<16x16xf32> to vector<16xf32>
    %78 = vector.shape_cast %77 : vector<16xf32> to vector<16x1xf32>
    %79 = vector.broadcast %78 : vector<16x1xf32> to vector<16x16xf32>
    %80 = arith.subf %76, %79 : vector<16x16xf32>
    %81 = math.exp %80 : vector<16x16xf32>
    %cst_27 = arith.constant dense<0.000000e+00> : vector<16xf32>
    %82 = vector.multi_reduction <add>, %81, %cst_27 [1] : vector<16x16xf32> to vector<16xf32>
    %83 = vector.shape_cast %82 : vector<16xf32> to vector<16x1xf32>
    %84 = tpu.reciprocal %83 {approx = true} : vector<16x1xf32> -> vector<16x1xf32>
    %85 = vector.broadcast %84 : vector<16x1xf32> to vector<16x16xf32>
    %86 = arith.mulf %81, %85 : vector<16x16xf32>
    %87 = arith.truncf %86 : vector<16x16xf32> to vector<16x16xbf16>
    %88 = arith.truncf %68 : vector<16x32xf32> to vector<16x32xbf16>
    %cst_28 = arith.constant dense<0.000000e+00> : vector<16x32xf32>
    %89 = tpu.matmul %87, %88, %cst_28 {dimension_numbers = #tpu.dot_dimension_numbers<[1], [0], [0], [1], [0, 0, 1, 1], [], []>} : vector<16x16xbf16>, vector<16x32xbf16>, vector<16x32xf32> -> vector<16x32xf32>
    %90 = arith.addf %65, %89 : vector<16x32xf32>
    %91 = vector.extract_strided_slice %6 {offsets = [0, 144], sizes = [16, 8], strides = [1, 1]} : vector<16x192xf32> to vector<16x8xf32>
    %92 = vector.extract_strided_slice %6 {offsets = [0, 176], sizes = [16, 8], strides = [1, 1]} : vector<16x192xf32> to vector<16x8xf32>
    %93 = vector.extract_strided_slice %6 {offsets = [0, 64], sizes = [16, 32], strides = [1, 1]} : vector<16x192xf32> to vector<16x32xf32>
    %94 = arith.truncf %91 : vector<16x8xf32> to vector<16x8xbf16>
    %95 = arith.truncf %92 : vector<16x8xf32> to vector<16x8xbf16>
    %cst_29 = arith.constant dense<0.000000e+00> : vector<16x16xf32>
    %96 = tpu.matmul %94, %95, %cst_29 {dimension_numbers = #tpu.dot_dimension_numbers<[1], [1], [0], [0], [0, 0, 1, 0], [], []>} : vector<16x8xbf16>, vector<16x8xbf16>, vector<16x16xf32> -> vector<16x16xf32>
    %c0_30 = arith.constant 0 : index
    %c0_31 = arith.constant 0 : index
    %c0_32 = arith.constant 0 : index
    %97 = vector.load %arg1[%c0_30, %c0_31, %c0_32] : memref<2x16x16xf32, #tpu.memory_space<vmem>>, vector<1x16x16xf32>
    %98 = vector.shape_cast %97 : vector<1x16x16xf32> to vector<16x16xf32>
    %99 = arith.addf %96, %98 : vector<16x16xf32>
    %cst_33 = arith.constant -1.000000e+30 : f32
    %100 = vector.broadcast %cst_33 : f32 to vector<16x16xf32>
    %101 = arith.select %41, %99, %100 : vector<16x16xi1>, vector<16x16xf32>
    %cst_34 = arith.constant dense<0xFF800000> : vector<16xf32>
    %102 = vector.multi_reduction <maximumf>, %101, %cst_34 [1] : vector<16x16xf32> to vector<16xf32>
    %103 = vector.shape_cast %102 : vector<16xf32> to vector<16x1xf32>
    %104 = vector.broadcast %103 : vector<16x1xf32> to vector<16x16xf32>
    %105 = arith.subf %101, %104 : vector<16x16xf32>
    %106 = math.exp %105 : vector<16x16xf32>
    %cst_35 = arith.constant dense<0.000000e+00> : vector<16xf32>
    %107 = vector.multi_reduction <add>, %106, %cst_35 [1] : vector<16x16xf32> to vector<16xf32>
    %108 = vector.shape_cast %107 : vector<16xf32> to vector<16x1xf32>
    %109 = tpu.reciprocal %108 {approx = true} : vector<16x1xf32> -> vector<16x1xf32>
    %110 = vector.broadcast %109 : vector<16x1xf32> to vector<16x16xf32>
    %111 = arith.mulf %106, %110 : vector<16x16xf32>
    %112 = arith.truncf %111 : vector<16x16xf32> to vector<16x16xbf16>
    %113 = arith.truncf %93 : vector<16x32xf32> to vector<16x32xbf16>
    %cst_36 = arith.constant dense<0.000000e+00> : vector<16x32xf32>
    %114 = tpu.matmul %112, %113, %cst_36 {dimension_numbers = #tpu.dot_dimension_numbers<[1], [0], [0], [1], [0, 0, 1, 1], [], []>} : vector<16x16xbf16>, vector<16x32xbf16>, vector<16x32xf32> -> vector<16x32xf32>
    %115 = arith.addf %90, %114 : vector<16x32xf32>
    %116 = vector.extract_strided_slice %6 {offsets = [0, 152], sizes = [16, 8], strides = [1, 1]} : vector<16x192xf32> to vector<16x8xf32>
    %117 = vector.extract_strided_slice %6 {offsets = [0, 184], sizes = [16, 8], strides = [1, 1]} : vector<16x192xf32> to vector<16x8xf32>
    %118 = vector.extract_strided_slice %6 {offsets = [0, 96], sizes = [16, 32], strides = [1, 1]} : vector<16x192xf32> to vector<16x32xf32>
    %119 = arith.truncf %116 : vector<16x8xf32> to vector<16x8xbf16>
    %120 = arith.truncf %117 : vector<16x8xf32> to vector<16x8xbf16>
    %cst_37 = arith.constant dense<0.000000e+00> : vector<16x16xf32>
    %121 = tpu.matmul %119, %120, %cst_37 {dimension_numbers = #tpu.dot_dimension_numbers<[1], [1], [0], [0], [0, 0, 1, 0], [], []>} : vector<16x8xbf16>, vector<16x8xbf16>, vector<16x16xf32> -> vector<16x16xf32>
    %c1_38 = arith.constant 1 : index
    %c0_39 = arith.constant 0 : index
    %c0_40 = arith.constant 0 : index
    %122 = vector.load %arg1[%c1_38, %c0_39, %c0_40] : memref<2x16x16xf32, #tpu.memory_space<vmem>>, vector<1x16x16xf32>
    %123 = vector.shape_cast %122 : vector<1x16x16xf32> to vector<16x16xf32>
    %124 = arith.addf %121, %123 : vector<16x16xf32>
    %cst_41 = arith.constant -1.000000e+30 : f32
    %125 = vector.broadcast %cst_41 : f32 to vector<16x16xf32>
    %126 = arith.select %41, %124, %125 : vector<16x16xi1>, vector<16x16xf32>
    %cst_42 = arith.constant dense<0xFF800000> : vector<16xf32>
    %127 = vector.multi_reduction <maximumf>, %126, %cst_42 [1] : vector<16x16xf32> to vector<16xf32>
    %128 = vector.shape_cast %127 : vector<16xf32> to vector<16x1xf32>
    %129 = vector.broadcast %128 : vector<16x1xf32> to vector<16x16xf32>
    %130 = arith.subf %126, %129 : vector<16x16xf32>
    %131 = math.exp %130 : vector<16x16xf32>
    %cst_43 = arith.constant dense<0.000000e+00> : vector<16xf32>
    %132 = vector.multi_reduction <add>, %131, %cst_43 [1] : vector<16x16xf32> to vector<16xf32>
    %133 = vector.shape_cast %132 : vector<16xf32> to vector<16x1xf32>
    %134 = tpu.reciprocal %133 {approx = true} : vector<16x1xf32> -> vector<16x1xf32>
    %135 = vector.broadcast %134 : vector<16x1xf32> to vector<16x16xf32>
    %136 = arith.mulf %131, %135 : vector<16x16xf32>
    %137 = arith.truncf %136 : vector<16x16xf32> to vector<16x16xbf16>
    %138 = arith.truncf %118 : vector<16x32xf32> to vector<16x32xbf16>
    %cst_44 = arith.constant dense<0.000000e+00> : vector<16x32xf32>
    %139 = tpu.matmul %137, %138, %cst_44 {dimension_numbers = #tpu.dot_dimension_numbers<[1], [0], [0], [1], [0, 0, 1, 1], [], []>} : vector<16x16xbf16>, vector<16x32xbf16>, vector<16x32xf32> -> vector<16x32xf32>
    %140 = arith.addf %115, %139 : vector<16x32xf32>
    %141 = arith.addf %0, %140 : vector<16x32xf32>
    %cst_45 = arith.constant dense<0.000000e+00> : vector<16xf32>
    %142 = vector.multi_reduction <add>, %141, %cst_45 [1] : vector<16x32xf32> to vector<16xf32>
    %143 = vector.shape_cast %142 : vector<16xf32> to vector<16x1xf32>
    %cst_46 = arith.constant 3.200000e+01 : f32
    %144 = vector.broadcast %cst_46 : f32 to vector<16x1xf32>
    %145 = arith.divf %143, %144 : vector<16x1xf32>
    %146 = vector.broadcast %145 : vector<16x1xf32> to vector<16x32xf32>
    %147 = arith.subf %141, %146 : vector<16x32xf32>
    %148 = arith.mulf %147, %147 : vector<16x32xf32>
    %cst_47 = arith.constant dense<0.000000e+00> : vector<16xf32>
    %149 = vector.multi_reduction <add>, %148, %cst_47 [1] : vector<16x32xf32> to vector<16xf32>
    %150 = vector.shape_cast %149 : vector<16xf32> to vector<16x1xf32>
    %cst_48 = arith.constant 3.200000e+01 : f32
    %151 = vector.broadcast %cst_48 : f32 to vector<16x1xf32>
    %152 = arith.divf %150, %151 : vector<16x1xf32>
    %cst_49 = arith.constant 9.99999974E-6 : f32
    %153 = vector.broadcast %cst_49 : f32 to vector<16x1xf32>
    %154 = arith.addf %152, %153 : vector<16x1xf32>
    %155 = math.rsqrt %154 : vector<16x1xf32>
    %156 = vector.broadcast %155 : vector<16x1xf32> to vector<16x32xf32>
    %157 = arith.mulf %147, %156 : vector<16x32xf32>
    %c3 = arith.constant 3 : index
    %c0_50 = arith.constant 0 : index
    %158 = vector.load %arg5[%c3, %c0_50] : memref<8x192xf32, #tpu.memory_space<vmem>>, vector<1x32xf32>
    %159 = vector.broadcast %158 : vector<1x32xf32> to vector<16x32xf32>
    %160 = arith.mulf %157, %159 : vector<16x32xf32>
    %c4 = arith.constant 4 : index
    %c0_51 = arith.constant 0 : index
    %161 = vector.load %arg5[%c4, %c0_51] : memref<8x192xf32, #tpu.memory_space<vmem>>, vector<1x32xf32>
    %162 = vector.broadcast %161 : vector<1x32xf32> to vector<16x32xf32>
    %163 = arith.addf %160, %162 : vector<16x32xf32>
    %164 = arith.truncf %163 : vector<16x32xf32> to vector<16x32xbf16>
    %c0_52 = arith.constant 0 : index
    %c0_53 = arith.constant 0 : index
    %165 = vector.load %arg3[%c0_52, %c0_53] : memref<32x64xbf16, #tpu.memory_space<vmem>>, vector<32x64xbf16>
    %cst_54 = arith.constant dense<0.000000e+00> : vector<16x64xf32>
    %166 = tpu.matmul %164, %165, %cst_54 {dimension_numbers = #tpu.dot_dimension_numbers<[1], [0], [0], [1], [0, 0, 1, 1], [], []>} : vector<16x32xbf16>, vector<32x64xbf16>, vector<16x64xf32> -> vector<16x64xf32>
    %c1_55 = arith.constant 1 : index
    %c0_56 = arith.constant 0 : index
    %167 = vector.load %arg5[%c1_55, %c0_56] : memref<8x192xf32, #tpu.memory_space<vmem>>, vector<1x64xf32>
    %168 = vector.broadcast %167 : vector<1x64xf32> to vector<16x64xf32>
    %169 = arith.addf %166, %168 : vector<16x64xf32>
    %cst_57 = arith.constant 0.000000e+00 : f32
    %170 = vector.broadcast %cst_57 : f32 to vector<16x64xf32>
    %171 = arith.maximumf %169, %170 : vector<16x64xf32>
    %172 = arith.truncf %171 : vector<16x64xf32> to vector<16x64xbf16>
    %c0_58 = arith.constant 0 : index
    %c0_59 = arith.constant 0 : index
    %173 = vector.load %arg4[%c0_58, %c0_59] : memref<64x32xbf16, #tpu.memory_space<vmem>>, vector<64x32xbf16>
    %cst_60 = arith.constant dense<0.000000e+00> : vector<16x32xf32>
    %174 = tpu.matmul %172, %173, %cst_60 {dimension_numbers = #tpu.dot_dimension_numbers<[1], [0], [0], [1], [0, 0, 1, 1], [], []>} : vector<16x64xbf16>, vector<64x32xbf16>, vector<16x32xf32> -> vector<16x32xf32>
    %c2 = arith.constant 2 : index
    %c0_61 = arith.constant 0 : index
    %175 = vector.load %arg5[%c2, %c0_61] : memref<8x192xf32, #tpu.memory_space<vmem>>, vector<1x32xf32>
    %176 = vector.broadcast %175 : vector<1x32xf32> to vector<16x32xf32>
    %177 = arith.addf %174, %176 : vector<16x32xf32>
    %178 = arith.addf %163, %177 : vector<16x32xf32>
    %cst_62 = arith.constant dense<0.000000e+00> : vector<16xf32>
    %179 = vector.multi_reduction <add>, %178, %cst_62 [1] : vector<16x32xf32> to vector<16xf32>
    %180 = vector.shape_cast %179 : vector<16xf32> to vector<16x1xf32>
    %cst_63 = arith.constant 3.200000e+01 : f32
    %181 = vector.broadcast %cst_63 : f32 to vector<16x1xf32>
    %182 = arith.divf %180, %181 : vector<16x1xf32>
    %183 = vector.broadcast %182 : vector<16x1xf32> to vector<16x32xf32>
    %184 = arith.subf %178, %183 : vector<16x32xf32>
    %185 = arith.mulf %184, %184 : vector<16x32xf32>
    %cst_64 = arith.constant dense<0.000000e+00> : vector<16xf32>
    %186 = vector.multi_reduction <add>, %185, %cst_64 [1] : vector<16x32xf32> to vector<16xf32>
    %187 = vector.shape_cast %186 : vector<16xf32> to vector<16x1xf32>
    %cst_65 = arith.constant 3.200000e+01 : f32
    %188 = vector.broadcast %cst_65 : f32 to vector<16x1xf32>
    %189 = arith.divf %187, %188 : vector<16x1xf32>
    %cst_66 = arith.constant 9.99999974E-6 : f32
    %190 = vector.broadcast %cst_66 : f32 to vector<16x1xf32>
    %191 = arith.addf %189, %190 : vector<16x1xf32>
    %192 = math.rsqrt %191 : vector<16x1xf32>
    %193 = vector.broadcast %192 : vector<16x1xf32> to vector<16x32xf32>
    %194 = arith.mulf %184, %193 : vector<16x32xf32>
    %c5 = arith.constant 5 : index
    %c0_67 = arith.constant 0 : index
    %195 = vector.load %arg5[%c5, %c0_67] : memref<8x192xf32, #tpu.memory_space<vmem>>, vector<1x32xf32>
    %196 = vector.broadcast %195 : vector<1x32xf32> to vector<16x32xf32>
    %197 = arith.mulf %194, %196 : vector<16x32xf32>
    %c6 = arith.constant 6 : index
    %c0_68 = arith.constant 0 : index
    %198 = vector.load %arg5[%c6, %c0_68] : memref<8x192xf32, #tpu.memory_space<vmem>>, vector<1x32xf32>
    %199 = vector.broadcast %198 : vector<1x32xf32> to vector<16x32xf32>
    %200 = arith.addf %197, %199 : vector<16x32xf32>
    %c0_69 = arith.constant 0 : index
    %c0_70 = arith.constant 0 : index
    %201 = vector.load %arg6[%c0_69, %c0_70] : memref<16x32xf32, #tpu.memory_space<vmem>>, vector<16x32xf32>
    tpu.vector_store %arg6[%c0_69, %c0_70], %200 {strides = array<i32>} : memref<16x32xf32, #tpu.memory_space<vmem>>, vector<16x32xf32>,
    return
  }
}

</mosaic_0001>

<bundles_post_ra>
// kernel: transformer_encoder_layer.1
= control target key start
LH: loop header
LB: loop body
LE: loop exit
PB: predicated region body
PF: predicated region fallthrough
CT: control target
= control target key end

     0   :  { %v1092_v2 = vmov 0   ;;  %vm64_vm0 = vcmask 261120   ;;  %s1359_s0 = inlined_call_operand.vmem [shape: f32[16,32], index: 0, kind: input, shape index: {}]   ;;  %s1360_s1 = inlined_call_operand.vmem [shape: f32[2,16,16], index: 1, kind: input, shape index: {}]   ;;  %s1361_s2 = inlined_call_operand.vmem [shape: bf16[32,192], index: 2, kind: input, shape index: {}]   ;;  %s1362_s3 = inlined_call_operand.vmem [shape: bf16[32,64], index: 3, kind: input, shape index: {}]   ;;  %s1363_s4 = inlined_call_operand.vmem [shape: bf16[64,32], index: 4, kind: input, shape index: {}]   ;;  %s1364_s5 = inlined_call_operand.vmem [shape: f32[8,192], index: 5, kind: input, shape index: {}]   ;;  %s1365_s6 = inlined_call_operand.hbm [shape: f32[16,32], index: 6, kind: output, shape index: {}]  }
   0x1   :  { %v1016_v0 = vld [vmem:[%s1361_s2 + $0x4] ss:$8 sps:$4 sm:$0xff]   ;;  %v1018_v1 = vld [vmem:[%s1361_s2] ss:$8 sps:$4 sm:$0xff]   ;;  %100 = vmatprep.mubr.bf16.mxu1 %v1092_v2  ;;  %v1019_v3 = vld [vmem:[%s1361_s2 + $0x14] ss:$8 sps:$4 sm:$0xff]  }
   0x2   :  { %68 = vmatprep.subr.bf16.mxu1 %v1016_v0  ;;  %v1021_v4 = vld [vmem:[%s1361_s2 + $0x10] ss:$8 sps:$4 sm:$0xff]   ;;  %v1157_v5 = vld [vmem:[%s1359_s0] sm:$0xff]  ;;  %v1162_v6 = vld [vmem:[%s1359_s0 + $0x8] sm:$0xff] }
   0x3   :  { %69 = vmatpush1.bf16.msra.mxu1 %v1018_v1  ;;  %v27_v7 = vpack.c.bf16 %v1162_v6, %v1157_v5 }
   0x4   :  { %70 = vmatprep.subr.bf16.mxu1 %v1019_v3 }
   0x7   :  { %71 = vmatpush1.bf16.msra.mxu1 %v1021_v4 }
   0x8   :  { %11 = vsyncpa [#allocation3], 0  ;;  %v34_v8 = vlaneseq  ;;  %v1093_v11 = vmov 0.0   ;;  %v32_v12 = vld [vmem:[%s1364_s5] ss:$8 sm:$0x3] }
   0x9   :  { %939 = vmatprep.subr.bf16.mxu0 %v1093_v11  ;;  %933 = vmatprep.subr.bf16.mxu1 %v1093_v11  ;;  %vm1094_vm1 = vmmov 0   ;;  %s1095_s9 = smov 88   ;;  %s1096_s10 = smov 120   ;;  %vm160_vm2 = vcmask 64512   ;;  %v1192_v33 = vld [vmem:[%s1360_s1 + $0x10] sm:$0xff]  ;;  %v1197_v36 = vld [vmem:[%s1360_s1 + $0x18] sm:$0xff] }
   0xa   :  { %890 = vmatmul.mubr.msk.bf16.vlgmr.msra.gmra.mrb[0].mxu1 %vm64_vm0, %v27_v7  ;;  %v35_v9 = vshrl.u32 %v34_v8, 7  ;;  %941 = vmatprep.mubr.msk.bf16.mxu0 %vm1094_vm1, %v1093_v11  ;;  %v115_v29 = vand.u32 127, %v34_v8  ;;  %vm210_vm4 = vcmask 130048   ;;  %s1097_s15 = smov 96   ;;  %s1098_s16 = smov 80   ;;  %vm789_vm6 = vcmask 523264  }
   0xb   :  { %935 = vmatprep.mubr.msk.bf16.mxu1 %vm1094_vm1, %v1093_v11  ;;  %s1099_s17 = smov 72   ;;  %s1100_s18 = smov 112  }
   0xc   :  { %v36_v10 = vsub.s32 0, %v35_v9  ;;  %v40_v13 = vsub.s32 1, %v35_v9  ;;  %v113_v30 = vadd.s32 8, %v35_v9  ;;  %v120_v31 = vand.u32 1, %v35_v9  ;;  %s1101_s19 = smov 104   ;;  %s1103_s24 = smov 32  }
   0xd   :  { %v144_v32 = vand.u32 1, %v115_v29  ;;  %s1104_s21 = smov [#allocation2]  }
   0xe   :  { %v37_v14 = vrot.slane %v32_v12, %v36_v10  ;;  %v41_v16 = vrot.slane %v32_v12, %v40_v13  ;;  %v127_v34 = vand.u32 1, %v113_v30  ;;  %v155_v13 = vld [vmem:[%s1360_s1] sm:$0xff]  ;;  %s875_s22 = sshll.u32 %s1104_s21, 4  ;;  %s876_s22 = int_to_ptr.vmem [resolvable:$true] %s875_s22 }
   0xf   :  { %vm1199_vm3 = vcmp.eq.s32.totalorder %v120_v31, %v144_v32  ;;  %s1068_s23 = scalar_lea.vmem %s876_s22, 256  ;;  %p1073_p1 = scmp.lt.s32.totalorder %s876_s22, %s876_s22 }
  0x10   :  { %vm1204_vm5 = vcmp.eq.s32.totalorder %v127_v34, %v144_v32  ;;  %p1069_p0 = scmp.ne.s32.totalorder %s876_s22, %s1068_s23  ;;  %p1074_p2 = scmp.lt.s32.totalorder %s1068_s23, %s1068_s23 }
  0x12   :  { %p1075_p3 = por %p1074_p2, %p1073_p1 }
  0x14   :  { %p1076_p4 = pnand %p1075_p3, %p1069_p0 }
  0xdd   :  { %v102_v15 = vpop.f32.mrb[0].mxu1 }
  0xde   :  { %v104_v17 = vpop.f32.mrb[1].mxu1  ;;  %v103_v19 = vadd.f32 %v102_v15, %v37_v14  ;;  %v156_v15 = vld [vmem:[%s1360_s1 + $0x8] sm:$0xff]  ;;  %s1102_s1 = smov 64  }
  0xdf   :  { %v106_v18 = vpop.f32.mrb[2].mxu1  ;;  %v105_v22 = vadd.f32 %v104_v17, %v41_v16 }
  0xe0   :  { %v107_v20 = vadd.f32 %v106_v18, %v37_v14  ;;  %v108_v21 = vpop.f32.mrb[3].mxu1 }
  0xe1   :  { %v109_v23 = vadd.f32 %v108_v21, %v41_v16 }
  0xe2   :  { %v1176_v24 = vpack.c.bf16 %v107_v20, %v103_v19 }
  0xe3   :  { %v1178_v25 = vpack.c.bf16 %v109_v23, %v105_v22 }
  0xe5   :  { %240 = vrot.lane.b32.xlu0 %v1178_v25, %s1095_s9 }
  0xe9   :  { %238 = vrot.lane.b32.xlu0 %v1178_v25, %s1096_s10 }
 0x157   :  { %v241_v26 = vpop.permute.xlu0 %240 }
 0x158   :  { %v246_v27 = vsel %vm160_vm2, %v241_v26, 0 }
 0x159   :  { %940 = vmatpush3.bf16.xpose.msra.mxu0 %v246_v27 }
 0x15a   :  { %951 = vmatprep.subr.bf16.mxu0 %v1093_v11 }
 0x15b   :  { %v239_v28 = vpop.permute.xlu0 %238 }
 0x160   :  { %942 = vmatmul.mubr.msk.bf16.vlgmr.msra.gmra.mrb[0].mxu0 %vm160_vm2, %v239_v28 }
 0x161   :  { %952 = vmatpush3.bf16.msra.mxu0 %v1176_v24  ;;  %953 = vmatprep.mubr.msk.bf16.mxu0 %vm1094_vm1, %v1093_v11 }
 0x162   :  { %963 = vmatprep.subr.bf16.mxu0 %v1093_v11 }
 0x233   :  { %v282_v35 = vpop.f32.mrb[0].mxu0 }
 0x234   :  { %v283_v38 = vadd.f32 %v1192_v33, %v282_v35  ;;  %v943_v39 = vpop.f32.mrb[1].mxu0 }
 0x235   :  { %v285_v40 = vpop.f32.mrb[2].mxu0 }
 0x236   :  { %v286_v42 = vadd.f32 %v1197_v36, %v285_v40  ;;  %v944_v43 = vpop.f32.mrb[3].mxu0  ;;  %v289_v44 = vsel %vm1199_vm3, %v283_v38, -1e+30 }
 0x237   :  { %v291_v45 = vsel %vm210_vm4, %v289_v44, -inf }
 0x238   :  { %292 = vmax.xlane.f32.xlu1 %v291_v45  ;;  %v290_v46 = vsel %vm1204_vm5, %v286_v42, -1e+30 }
 0x239   :  { %v294_v47 = vsel %vm210_vm4, %v290_v46, -inf }
 0x23c   :  { %295 = vmax.xlane.f32.xlu1 %v294_v47 }
 0x24d   :  { %158 = vrot.lane.b32.xlu1 %v1178_v25, %s1097_s15 }
 0x251   :  { %315 = vrot.lane.b32.xlu1 %v1176_v24, %s1097_s15 }
 0x2c5   :  { %v293_v48 = vpop.xlane.xlu1 %292 }
 0x2c6   :  { %v297_v49 = vsub.f32 %v289_v44, %v293_v48 }
 0x2c8   :  { %v299_v50 = vmul.f32 1.442695, %v297_v49 }
 0x2c9   :  { %v296_v51 = vpop.xlane.xlu1 %295 }
 0x2ca   :  { %1028 = vpow2.f32 %v299_v50  ;;  %v298_v52 = vsub.f32 %v290_v46, %v296_v51 }
 0x2cc   :  { %v301_v53 = vmul.f32 1.442695, %v298_v52 }
 0x2cd   :  { %v159_v54 = vpop.permute.xlu1 %158 }
 0x2ce   :  { %1030 = vpow2.f32 %v301_v53  ;;  %v165_v55 = vsel %vm160_vm2, %v159_v54, 0 }
 0x2cf   :  { %934 = vmatpush3.bf16.xpose.msra.mxu1 %v165_v55 }
 0x2d0   :  { %945 = vmatprep.subr.bf16.mxu1 %v1093_v11 }
 0x2d1   :  { %v316_v58 = vpop.permute.xlu1 %315 }
 0x2d4   :  { %v1029_v56 = vpop.eup %1028 }
 0x2d5   :  { %v303_v57 = vsel %vm210_vm4, %v1029_v56, 0.0 }
 0x2d6   :  { %304 = vadd.xlane.f32.xlu0 %v303_v57  ;;  %936 = vmatmul.mubr.msk.bf16.vlgmr.msra.gmra.mrb[4].mxu1 %vm160_vm2, %v1178_v25 }
 0x2d7   :  { %946 = vmatpush3.bf16.msra.mxu1 %v316_v58  ;;  %947 = vmatprep.mubr.msk.bf16.mxu1 %vm1094_vm1, %v1093_v11 }
 0x2d8   :  { %v1031_v59 = vpop.eup %1030  ;;  %957 = vmatprep.subr.bf16.mxu1 %v1093_v11 }
 0x2d9   :  { %v306_v60 = vsel %vm210_vm4, %v1031_v59, 0.0 }
 0x2da   :  { %307 = vadd.xlane.f32.xlu1 %v306_v60 }
 0x2eb   :  { %408 = vrot.lane.b32.xlu1 %v1178_v25, %s1098_s16 }
 0x2ec   :  { %533 = vrot.lane.b32.xlu0 %v1178_v25, %s1099_s17 }
 0x2ef   :  { %406 = vrot.lane.b32.xlu1 %v1178_v25, %s1100_s18 }
 0x2f3   :  { %531 = vrot.lane.b32.xlu1 %v1178_v25, %s1101_s19 }
 0x363   :  { %v305_v61 = vpop.xlane.xlu0 %304 }
 0x364   :  { %1032 = vrcp.f32 %v305_v61 }
 0x367   :  { %v308_v62 = vpop.xlane.xlu1 %307  ;;  %v534_v8 = vpop.permute.xlu0 %533 }
 0x368   :  { %1034 = vrcp.f32 %v308_v62  ;;  %v539_v10 = vsel %vm160_vm2, %v534_v8, 0 }
 0x36b   :  { %v409_v3 = vpop.permute.xlu1 %408 }
 0x36c   :  { %v414_v7 = vsel %vm160_vm2, %v409_v3, 0 }
 0x36e   :  { %v1033_v63 = vpop.eup %1032 }
 0x36f   :  { %v311_v1 = vmul.f32 %v1033_v63, %v1029_v56  ;;  %v407_v9 = vpop.permute.xlu1 %406 }
 0x372   :  { %v1035_v0 = vpop.eup %1034 }
 0x373   :  { %v312_v2 = vmul.f32 %v1035_v0, %v1031_v59  ;;  %v532_v12 = vpop.permute.xlu1 %531 }
 0x375   :  { %v313_v4 = vpack.c.bf16 %v312_v2, %v311_v1 }
 0x377   :  { %948 = vmatmul.mubr.msk.bf16.vlgmr.msra.gmra.mrb[8].mxu1 %vm210_vm4, %v313_v4 }
 0x378   :  { %958 = vmatpush3.bf16.xpose.msra.mxu1 %v414_v7  ;;  %959 = vmatprep.mubr.msk.bf16.mxu1 %vm1094_vm1, %v1093_v11 }
 0x379   :  { %969 = vmatprep.subr.bf16.mxu1 %v1093_v11 }
 0x37f   :  { %960 = vmatmul.mubr.msk.bf16.vlgmr.msra.gmra.mrb[12].mxu1 %vm160_vm2, %v407_v9 }
 0x380   :  { %970 = vmatpush3.bf16.xpose.msra.mxu1 %v539_v10  ;;  %971 = vmatprep.mubr.msk.bf16.mxu1 %vm1094_vm1, %v1093_v11 }
 0x381   :  { %981 = vmatprep.subr.bf16.mxu1 %v1093_v11 }
 0x387   :  { %972 = vmatmul.mubr.msk.bf16.vlgmr.msra.gmra.mrb[16].mxu1 %vm160_vm2, %v532_v12 }
 0x388   :  { %985 = vmatprep.mubr.msk.bf16.mxu1 %vm1094_vm1, %v1093_v11 }
 0x3a9   :  { %v201_v14 = vpop.f32.mrb[4].mxu1 }
 0x3aa   :  { %v202_v16 = vadd.f32 %v201_v14, %v155_v13  ;;  %v937_v17 = vpop.f32.mrb[5].mxu1 }
 0x3ab   :  { %v204_v18 = vpop.f32.mrb[6].mxu1 }
 0x3ac   :  { %v205_v19 = vadd.f32 %v204_v18, %v156_v15  ;;  %v938_v20 = vpop.f32.mrb[7].mxu1  ;;  %v208_v21 = vsel %vm1199_vm3, %v202_v16, -1e+30 }
 0x3ad   :  { %v211_v22 = vsel %vm210_vm4, %v208_v21, -inf }
 0x3ae   :  { %212 = vmax.xlane.f32.xlu1 %v211_v22  ;;  %v209_v23 = vsel %vm1204_vm5, %v205_v19, -1e+30 }
 0x3af   :  { %v214_v25 = vsel %vm210_vm4, %v209_v23, -inf }
 0x3b0   :  { %215 = vmax.xlane.f32.xlu0 %v214_v25 }
 0x43b   :  { %v213_v26 = vpop.xlane.xlu1 %212 }
 0x43c   :  { %v217_v31 = vsub.f32 %v208_v21, %v213_v26 }
 0x43d   :  { %v216_v29 = vpop.xlane.xlu0 %215 }
 0x43e   :  { %v218_v34 = vsub.f32 %v209_v23, %v216_v29  ;;  %v219_v35 = vmul.f32 1.442695, %v217_v31 }
 0x440   :  { %v221_v39 = vmul.f32 1.442695, %v218_v34  ;;  %1036 = vpow2.f32 %v219_v35 }
 0x442   :  { %1038 = vpow2.f32 %v221_v39 }
 0x44a   :  { %v1255_v27 = vpop.f32.mrb[8].mxu1  ;;  %v1037_v58 = vpop.eup %1036 }
 0x44b   :  { %v949_v28 = vpop.f32.mrb[9].mxu1 }
 0x44c   :  { %v1257_v30 = vpop.f32.mrb[10].mxu1  ;;  %v1039_v61 = vpop.eup %1038 }
 0x44d   :  { %v950_v32 = vpop.f32.mrb[11].mxu1 }
 0x452   :  { %v450_v38 = vpop.f32.mrb[12].mxu1 }
 0x453   :  { %v451_v40 = vadd.f32 %v450_v38, %v155_v13  ;;  %v961_v42 = vpop.f32.mrb[13].mxu1 }
 0x454   :  { %v453_v43 = vpop.f32.mrb[14].mxu1 }
 0x455   :  { %v454_v44 = vadd.f32 %v453_v43, %v156_v15  ;;  %v962_v45 = vpop.f32.mrb[15].mxu1  ;;  %v457_v46 = vsel %vm1199_vm3, %v451_v40, -1e+30 }
 0x456   :  { %v459_v47 = vsel %vm210_vm4, %v457_v46, -inf }
 0x457   :  { %460 = vmax.xlane.f32.xlu1 %v459_v47  ;;  %v458_v48 = vsel %vm1204_vm5, %v454_v44, -1e+30 }
 0x458   :  { %v462_v50 = vsel %vm210_vm4, %v458_v48, -inf }
 0x45a   :  { %v575_v49 = vpop.f32.mrb[16].mxu1 }
 0x45b   :  { %v576_v51 = vadd.f32 %v1192_v33, %v575_v49  ;;  %463 = vmax.xlane.f32.xlu1 %v462_v50  ;;  %v973_v52 = vpop.f32.mrb[17].mxu1  ;;  %v223_v33 = vsel %vm210_vm4, %v1037_v58, 0.0 }
 0x45c   :  { %v578_v53 = vpop.f32.mrb[18].mxu1 }
 0x45d   :  { %v579_v54 = vadd.f32 %v1197_v36, %v578_v53  ;;  %v974_v55 = vpop.f32.mrb[19].mxu1  ;;  %v582_v56 = vsel %vm1199_vm3, %v576_v51, -1e+30  ;;  %v226_v36 = vsel %vm210_vm4, %v1039_v61, 0.0 }
 0x45e   :  { %v584_v57 = vsel %vm210_vm4, %v582_v56, -inf }
 0x45f   :  { %585 = vmax.xlane.f32.xlu1 %v584_v57  ;;  %v583_v59 = vsel %vm1204_vm5, %v579_v54, -1e+30 }
 0x460   :  { %v587_v60 = vsel %vm210_vm4, %v583_v59, -inf }
 0x461   :  { %588 = vmax.xlane.f32.xlu0 %v587_v60 }
 0x463   :  { %224 = vadd.xlane.f32.xlu1 %v223_v33 }
 0x465   :  { %227 = vadd.xlane.f32.xlu0 %v226_v36 }
 0x4e4   :  { %v461_v62 = vpop.xlane.xlu1 %460 }
 0x4e5   :  { %v465_v37 = vsub.f32 %v457_v46, %v461_v62 }
 0x4e7   :  { %v467_v63 = vmul.f32 1.442695, %v465_v37 }
 0x4e8   :  { %v464_v0 = vpop.xlane.xlu1 %463 }
 0x4e9   :  { %1040 = vpow2.f32 %v467_v63  ;;  %v466_v1 = vsub.f32 %v458_v48, %v464_v0 }
 0x4eb   :  { %v469_v2 = vmul.f32 1.442695, %v466_v1 }
 0x4ec   :  { %v586_v3 = vpop.xlane.xlu1 %585 }
 0x4ed   :  { %1042 = vpow2.f32 %v469_v2  ;;  %v590_v41 = vsub.f32 %v582_v56, %v586_v3 }
 0x4ee   :  { %v589_v4 = vpop.xlane.xlu0 %588 }
 0x4ef   :  { %v592_v7 = vmul.f32 1.442695, %v590_v41  ;;  %v591_v8 = vsub.f32 %v583_v59, %v589_v4 }
 0x4f0   :  { %v225_v9 = vpop.xlane.xlu1 %224 }
 0x4f1   :  { %1044 = vpow2.f32 %v592_v7  ;;  %v594_v10 = vmul.f32 1.442695, %v591_v8 }
 0x4f2   :  { %1046 = vrcp.f32 %v225_v9  ;;  %v228_v12 = vpop.xlane.xlu0 %227 }
 0x4f3   :  { %v1041_v13 = vpop.eup %1040  ;;  %1048 = vpow2.f32 %v594_v10 }
 0x4f4   :  { %1050 = vrcp.f32 %v228_v12  ;;  %v471_v14 = vsel %vm210_vm4, %v1041_v13, 0.0  ;;  %v1023_v12 = vld [vmem:[%s1362_s3 + $0x8] sm:$0xff]  }
 0x4f5   :  { %472 = vadd.xlane.f32.xlu1 %v471_v14  ;;  %v1025_v14 = vld [vmem:[%s1363_s4 + $0x8] sm:$0xff]  }
 0x4f7   :  { %v1043_v15 = vpop.eup %1042 }
 0x4f8   :  { %v474_v16 = vsel %vm210_vm4, %v1043_v15, 0.0 }
 0x4f9   :  { %475 = vadd.xlane.f32.xlu0 %v474_v16 }
 0x4fb   :  { %v1045_v17 = vpop.eup %1044 }
 0x4fc   :  { %v1047_v18 = vpop.eup %1046  ;;  %v596_v19 = vsel %vm210_vm4, %v1045_v17, 0.0 }
 0x4fd   :  { %v1049_v20 = vpop.eup %1048  ;;  %597 = vadd.xlane.f32.xlu1 %v596_v19  ;;  %v231_v23 = vmul.f32 %v1047_v18, %v1037_v58 }
 0x4fe   :  { %v1051_v21 = vpop.eup %1050  ;;  %v599_v22 = vsel %vm210_vm4, %v1049_v20, 0.0 }
 0x4ff   :  { %v232_v25 = vmul.f32 %v1051_v21, %v1039_v61  ;;  %600 = vadd.xlane.f32.xlu0 %v599_v22  ;;  %v685_v22 = vld [vmem:[%s1364_s5 + $0x3] ss:$0 sm:$0xff] }
 0x501   :  { %v233_v26 = vpack.c.bf16 %v232_v25, %v231_v23 }
 0x503   :  { %954 = vmatmul.mubr.msk.bf16.vlgmr.msra.gmra.mrb[4].mxu0 %vm210_vm4, %v233_v26 }
 0x504   :  { %965 = vmatprep.mubr.msk.bf16.mxu0 %vm1094_vm1, %v1093_v11 }
 0x50e   :  { %482 = vrot.lane.b32.xlu1 %v1176_v24, %s1102_s1 }
 0x515   :  { %607 = vrot.lane.b32.xlu0 %v1176_v24, %s1103_s24 }
 0x582   :  { %v473_v28 = vpop.xlane.xlu1 %472 }
 0x583   :  { %1052 = vrcp.f32 %v473_v28 }
 0x586   :  { %v476_v29 = vpop.xlane.xlu0 %475 }
 0x587   :  { %1054 = vrcp.f32 %v476_v29  ;;  %v688_v29 = vld [vmem:[%s1364_s5 + $0x4] ss:$0 sm:$0xff] }
 0x58a   :  { %v598_v31 = vpop.xlane.xlu1 %597 }
 0x58b   :  { %1056 = vrcp.f32 %v598_v31 }
 0x58c   :  { %v601_v32 = vpop.xlane.xlu0 %600 }
 0x58d   :  { %1058 = vrcp.f32 %v601_v32  ;;  %v1053_v35 = vpop.eup %1052 }
 0x58e   :  { %v483_v34 = vpop.permute.xlu1 %482  ;;  %v479_v39 = vmul.f32 %v1053_v35, %v1041_v13  ;;  %v1024_v13 = vld [vmem:[%s1363_s4] sm:$0xff]  }
 0x58f   :  { %964 = vmatpush3.bf16.msra.mxu0 %v483_v34 }
 0x590   :  { %975 = vmatprep.subr.bf16.mxu0 %v1093_v11  ;;  %v608_v44 = vpop.permute.xlu0 %607 }
 0x591   :  { %v1055_v38 = vpop.eup %1054 }
 0x592   :  { %v480_v40 = vmul.f32 %v1055_v38, %v1043_v15  ;;  %v1026_v38 = vld [vmem:[%s1363_s4 + $0x10] sm:$0xff]  }
 0x594   :  { %v481_v42 = vpack.c.bf16 %v480_v40, %v479_v39  ;;  %v1027_v39 = vld [vmem:[%s1363_s4 + $0x18] sm:$0xff]   ;;  %v696_v40 = vld [vmem:[%s1364_s5 + $0x1] ss:$0 sm:$0xff] }
 0x595   :  { %v1057_v43 = vpop.eup %1056 }
 0x596   :  { %966 = vmatmul.mubr.msk.bf16.vlgmr.msra.gmra.mrb[8].mxu0 %vm210_vm4, %v481_v42  ;;  %v604_v46 = vmul.f32 %v1057_v43, %v1045_v17 }
 0x597   :  { %v1059_v24 = vpop.eup %1058  ;;  %976 = vmatpush3.bf16.msra.mxu0 %v608_v44  ;;  %977 = vmatprep.mubr.msk.bf16.mxu0 %vm1094_vm1, %v1093_v11 }
 0x598   :  { %v605_v45 = vmul.f32 %v1059_v24, %v1049_v20  ;;  %989 = vmatprep.subr.bf16.mxu0 %v1093_v11 }
 0x59a   :  { %v606_v47 = vpack.c.bf16 %v605_v45, %v604_v46 }
 0x59e   :  { %978 = vmatmul.mubr.msk.bf16.vlgmr.msra.gmra.mrb[12].mxu0 %vm210_vm4, %v606_v47 }
 0x59f   :  { %997 = vmatprep.mubr.msk.bf16.mxu0 %vm1094_vm1, %v1093_v11  ;;  %990 = vmatpush3.bf16.msra.mxu0 %v1024_v13 }
 0x5a0   :  { %991 = vmatprep.subr.bf16.mxu0 %v1093_v11 }
 0x5a3   :  { %992 = vmatpush3.bf16.msra.mxu0 %v1025_v14 }
 0x5a4   :  { %993 = vmatprep.subr.bf16.mxu0 %v1093_v11 }
 0x5a7   :  { %994 = vmatpush3.bf16.msra.mxu0 %v1026_v38 }
 0x5a8   :  { %995 = vmatprep.subr.bf16.mxu0 %v1093_v11 }
 0x5ab   :  { %996 = vmatpush3.bf16.msra.mxu0 %v1027_v39 }
 0x5d6   :  { %v399_v48 = vpop.f32.mrb[4].mxu0 }
 0x5d7   :  { %v400_v49 = vadd.f32 %v399_v48, %v1255_v27  ;;  %v955_v50 = vpop.f32.mrb[5].mxu0 }
 0x5d8   :  { %v402_v51 = vpop.f32.mrb[6].mxu0 }
 0x5d9   :  { %v403_v52 = vadd.f32 %v402_v51, %v1257_v30  ;;  %v956_v53 = vpop.f32.mrb[7].mxu0 }
 0x669   :  { %v522_v54 = vpop.f32.mrb[8].mxu0 }
 0x66a   :  { %v529_v55 = vadd.f32 %v522_v54, %v400_v49  ;;  %v967_v56 = vpop.f32.mrb[9].mxu0 }
 0x66b   :  { %v525_v57 = vpop.f32.mrb[10].mxu0 }
 0x66c   :  { %v530_v58 = vadd.f32 %v525_v57, %v403_v52  ;;  %v968_v59 = vpop.f32.mrb[11].mxu0 }
 0x671   :  { %v647_v60 = vpop.f32.mrb[12].mxu0 }
 0x672   :  { %v654_v61 = vadd.f32 %v647_v60, %v529_v55  ;;  %v979_v33 = vpop.f32.mrb[13].mxu0 }
 0x673   :  { %v650_v36 = vpop.f32.mrb[14].mxu0 }
 0x674   :  { %v655_v62 = vadd.f32 %v650_v36, %v530_v58  ;;  %v980_v37 = vpop.f32.mrb[15].mxu0  ;;  %v656_v63 = vadd.f32 %v654_v61, %v1157_v5 }
 0x676   :  { %v658_v27 = vsel %vm64_vm0, %v656_v63, 0.0  ;;  %v657_v0 = vadd.f32 %v655_v62, %v1162_v6  ;;  %v1022_v6 = vld [vmem:[%s1362_s3] sm:$0xff]  }
 0x677   :  { %659 = vadd.xlane.f32.xlu1 %v658_v27  ;;  %982 = vmatpush3.bf16.msra.mxu1 %v1022_v6  ;;  %v865_v6 = vld [vmem:[%s1364_s5 + $0x6] ss:$0 sm:$0xff] }
 0x678   :  { %v661_v30 = vsel %vm64_vm0, %v657_v0, 0.0  ;;  %983 = vmatprep.subr.bf16.mxu1 %v1093_v11  ;;  %v764_v11 = vld [vmem:[%s1364_s5 + $0x2] ss:$0 sm:$0xff] }
 0x679   :  { %662 = vadd.xlane.f32.xlu0 %v661_v30 }
 0x67b   :  { %984 = vmatpush3.bf16.msra.mxu1 %v1023_v12 }
 0x704   :  { %v660_v1 = vpop.xlane.xlu1 %659 }
 0x705   :  { %v665_v2 = vmul.f32 0.03125, %v660_v1 }
 0x706   :  { %v663_v3 = vpop.xlane.xlu0 %662 }
 0x707   :  { %v667_v41 = vsub.f32 %v656_v63, %v665_v2  ;;  %v666_v4 = vmul.f32 0.03125, %v663_v3 }
 0x709   :  { %v668_v7 = vsub.f32 %v657_v0, %v666_v4  ;;  %v669_v8 = vmul.f32 %v667_v41, %v667_v41 }
 0x70b   :  { %v671_v9 = vsel %vm64_vm0, %v669_v8, 0.0  ;;  %v670_v10 = vmul.f32 %v668_v7, %v668_v7 }
 0x70c   :  { %672 = vadd.xlane.f32.xlu1 %v671_v9  ;;  %v862_v9 = vld [vmem:[%s1364_s5 + $0x5] ss:$0 sm:$0xff] }
 0x70d   :  { %v674_v5 = vsel %vm64_vm0, %v670_v10, 0.0 }
 0x70e   :  { %675 = vadd.xlane.f32.xlu0 %v674_v5 }
 0x799   :  { %v673_v15 = vpop.xlane.xlu1 %672 }
 0x79a   :  { %v677_v16 = vmul.f32 0.03125, %v673_v15 }
 0x79b   :  { %v676_v17 = vpop.xlane.xlu0 %675 }
 0x79c   :  { %v679_v18 = vadd.f32 1e-05, %v677_v16  ;;  %v678_v19 = vmul.f32 0.03125, %v676_v17 }
 0x79e   :  { %1060 = vrsqrt.f32 %v679_v18  ;;  %v680_v20 = vadd.f32 1e-05, %v678_v19 }
 0x7a0   :  { %1062 = vrsqrt.f32 %v680_v20 }
 0x7a8   :  { %v1061_v21 = vpop.eup %1060 }
 0x7a9   :  { %v683_v23 = vmul.f32 %v1061_v21, %v667_v41 }
 0x7aa   :  { %v1063_v25 = vpop.eup %1062 }
 0x7ab   :  { %v686_v26 = vmul.f32 %v685_v22, %v683_v23  ;;  %v684_v28 = vmul.f32 %v1063_v25, %v668_v7 }
 0x7ad   :  { %v687_v31 = vmul.f32 %v685_v22, %v684_v28  ;;  %v689_v32 = vadd.f32 %v688_v29, %v686_v26 }
 0x7af   :  { %v690_v34 = vadd.f32 %v688_v29, %v687_v31 }
 0x7b1   :  { %v691_v35 = vpack.c.bf16 %v690_v34, %v689_v32 }
 0x7b3   :  { %986 = vmatmul.mubr.msk.bf16.vlgmr.msra.gmra.mrb[20].mxu1 %vm64_vm0, %v691_v35 }
 0x886   :  { %v746_v42 = vpop.f32.mrb[20].mxu1 }
 0x887   :  { %v747_v43 = vadd.f32 %v746_v42, %v696_v40  ;;  %v987_v44 = vpop.f32.mrb[21].mxu1 }
 0x888   :  { %v749_v24 = vpop.f32.mrb[22].mxu1 }
 0x889   :  { %v750_v45 = vadd.f32 %v749_v24, %v696_v40  ;;  %v988_v46 = vpop.f32.mrb[23].mxu1  ;;  %v753_v47 = vmax.f32 %v747_v43, 0.0 }
 0x88b   :  { %v754_v48 = vmax.f32 %v750_v45, 0.0 }
 0x88d   :  { %v755_v49 = vpack.c.bf16 %v754_v48, %v753_v47 }
 0x88f   :  { %998 = vmatmul.mubr.msk.bf16.vlgmr.msra.gmra.mrb[16].mxu0 %vm789_vm6, %v755_v49 }
 0x962   :  { %v827_v50 = vpop.f32.mrb[16].mxu0 }
 0x963   :  { %v828_v51 = vadd.f32 %v827_v50, %v764_v11  ;;  %v999_v52 = vpop.f32.mrb[17].mxu0 }
 0x964   :  { %v830_v53 = vpop.f32.mrb[18].mxu0 }
 0x965   :  { %v831_v54 = vadd.f32 %v830_v53, %v764_v11  ;;  %v1000_v55 = vpop.f32.mrb[19].mxu0  ;;  %v834_v56 = vadd.f32 %v828_v51, %v689_v32 }
 0x967   :  { %v836_v57 = vsel %vm64_vm0, %v834_v56, 0.0  ;;  %v835_v58 = vadd.f32 %v831_v54, %v690_v34 }
 0x968   :  { %837 = vadd.xlane.f32.xlu1 %v836_v57 }
 0x969   :  { %v839_v59 = vsel %vm64_vm0, %v835_v58, 0.0 }
 0x96a   :  { %840 = vadd.xlane.f32.xlu0 %v839_v59 }
 0x9f5   :  { %v838_v60 = vpop.xlane.xlu1 %837 }
 0x9f6   :  { %v842_v61 = vmul.f32 0.03125, %v838_v60 }
 0x9f7   :  { %v841_v33 = vpop.xlane.xlu0 %840 }
 0x9f8   :  { %v844_v36 = vsub.f32 %v834_v56, %v842_v61  ;;  %v843_v62 = vmul.f32 0.03125, %v841_v33 }
 0x9fa   :  { %v845_v37 = vsub.f32 %v835_v58, %v843_v62  ;;  %v846_v63 = vmul.f32 %v844_v36, %v844_v36 }
 0x9fc   :  { %v848_v27 = vsel %vm64_vm0, %v846_v63, 0.0  ;;  %v847_v0 = vmul.f32 %v845_v37, %v845_v37 }
 0x9fd   :  { %849 = vadd.xlane.f32.xlu1 %v848_v27 }
 0x9fe   :  { %v851_v30 = vsel %vm64_vm0, %v847_v0, 0.0 }
 0x9ff   :  { %852 = vadd.xlane.f32.xlu0 %v851_v30 }
 0xa8a   :  { %v850_v1 = vpop.xlane.xlu1 %849 }
 0xa8b   :  { %v854_v2 = vmul.f32 0.03125, %v850_v1 }
 0xa8c   :  { %v853_v3 = vpop.xlane.xlu0 %852 }
 0xa8d   :  { %v856_v41 = vadd.f32 1e-05, %v854_v2  ;;  %v855_v4 = vmul.f32 0.03125, %v853_v3 }
 0xa8f   :  { %1064 = vrsqrt.f32 %v856_v41  ;;  %v857_v7 = vadd.f32 1e-05, %v855_v4 }
 0xa91   :  { %1066 = vrsqrt.f32 %v857_v7 }
 0xa99   :  { %v1065_v8 = vpop.eup %1064 }
 0xa9a   :  { %v860_v10 = vmul.f32 %v1065_v8, %v844_v36 }
 0xa9b   :  { %v1067_v5 = vpop.eup %1066 }
 0xa9c   :  { %v861_v12 = vmul.f32 %v1067_v5, %v845_v37  ;;  %v863_v13 = vmul.f32 %v862_v9, %v860_v10 }
 0xa9e   :  { %v864_v14 = vmul.f32 %v862_v9, %v861_v12  ;;  %v866_v15 = vadd.f32 %v865_v6, %v863_v13 }
 0xaa0   :  { %v867_v16 = vadd.f32 %v865_v6, %v864_v14  ;;  %868 = vst.msk [vmem:[#allocation2] sm:$0xff] %vm64_vm0, %v866_v15 }
 0xaa2   :  { %869 = vst.msk [vmem:[#allocation2 + $0x8] sm:$0xff] %vm64_vm0, %v867_v16 }
 0xaa3   :  { %1079 = shalt.err (!%p1076_p4)
}
 0xaa4   :  { %s1080_s24 = scalar_lea.hbm %s1365_s6, 256 }
 0xaa5   :  { %p1081_p5 = scmp.ne.s32.totalorder %s1365_s6, %s1080_s24  ;;  %p1084_p6 = scmp.lt.u32.totalorder %s1080_s24, %s1365_s6 }
 0xaa7   :  { %p1086_p7 = pnand %p1084_p6, %p1081_p5 }
 0xaa9   :  { %1089 = shalt.err (!%p1086_p7)
}
 0xaaa   :  { %s1105_s29 = smov 128   ;;  %s1106_s30 = smov 8  }
 0xaab   :  { %881 = dma.vmem_to_hbm [thread:$0]  %s876_s22, 256, %s1365_s6, [#allocation3], %s1105_s29, %s1105_s29, %s1106_s30  }
 0xaac   :  { %1090 = dma.done.wait [#allocation3], 256  }
 0xaad   :  { %1091 = vsyncadd [#allocation3], 4294967040 }
 0xaae   :  { %885 = vsyncpa [#allocation3], 1 }

</bundles_post_ra>
